<compile_context>
chip_gen: v7x
topology: tpu7x:2x2x1
jax: 0.10.0
libtpu: 0.0.40
codegen_flags: <defaults>
</compile_context>

<pallas_src>
import functools

import jax
import jax.numpy as jnp
from jax import lax
from jax.experimental import pallas as pl
from jax.experimental.pallas import tpu as pltpu


def _round_up(x, m):
    return (x + m - 1) // m * m


def supcon_kernel(cfeat_ref, lab_row_ref, lab_col_ref, o_ref, *, tm, n_valid, inv_temp):
    """One grid step = one strip of `tm` anchor rows vs. all N_pad contrast columns.

    cfeat_ref   : [N_pad, D_pad]  L2-normalized contrast features (matmul operand dtype),
                  resident across grid steps (constant index_map).
    lab_row_ref : [tm, 1]   int32 labels of this anchor strip (padded rows = -1).
    lab_col_ref : [1, N_pad] int32 labels of all contrast samples (padded cols = -1).
    o_ref       : [1, 1, 128] f32 per-tile partial loss sum (broadcast across lanes).
    """
    row_start = pl.multiple_of(pl.program_id(0) * tm, tm)

    c_all = cfeat_ref[...]                                   # [N_pad, D_pad]
    n_pad = c_all.shape[0]

    # Anchors are rows of the same matrix (contrast_mode='all').  Fold 1/T into the LHS
    # operand (O(tm*D) work) instead of scaling the [tm, N_pad] logits.  Scale in f32
    # (no bf16 VALU dependence), then cast to the MXU operand dtype.
    a_tile = cfeat_ref[pl.ds(row_start, tm), :].astype(jnp.float32) * inv_temp
    a_tile = a_tile.astype(c_all.dtype)                      # [tm, D_pad]

    # logits = (anchor / T) @ contrast^T ; transpose absorbed into dot_general, f32 accum.
    logits = lax.dot_general(
        a_tile, c_all,
        dimension_numbers=(((1,), (1,)), ((), ())),
        preferred_element_type=jnp.float32)                  # [tm, N_pad]

    col = lax.broadcasted_iota(jnp.int32, (tm, n_pad), 1)
    row_g = lax.broadcasted_iota(jnp.int32, (tm, n_pad), 0) + row_start
    keep = (col != row_g) & (col < n_valid)      # drop self-contrast + padded columns

    # Numerically-stable shift.  The max includes the diagonal, exactly like the PyTorch
    # reference; padded columns (logit == 0) never exceed the diagonal (1/T) for valid rows.
    row_max = jnp.max(logits, axis=1, keepdims=True)
    shifted = logits - row_max
    exp_kept = jnp.where(keep, jnp.exp(shifted), 0.0)
    log_z = jnp.log(jnp.sum(exp_kept, axis=1, keepdims=True))        # [tm, 1]

    # Fused positive mask + reduction: sum(mask*log_prob) = sum(mask*shifted) - cnt*log(Z).
    pos = jnp.where((lab_row_ref[...] == lab_col_ref[...]) & keep, 1.0, 0.0)
    pos_cnt = jnp.sum(pos, axis=1, keepdims=True)                    # [tm, 1]
    pos_logit = jnp.sum(pos * shifted, axis=1, keepdims=True)        # [tm, 1]
    mean_log_prob_pos = (pos_logit - pos_cnt * log_z) / jnp.maximum(pos_cnt, 1.0)

    # Padded anchor rows and anchors with zero positives contribute 0.
    # (The PyTorch original would produce NaN for zero-positive anchors; guarded here.)
    row_g1 = lax.broadcasted_iota(jnp.int32, (tm, 1), 0) + row_start
    row_ok = (row_g1 < n_valid) & (pos_cnt > 0.0)
    tile_sum = jnp.sum(jnp.where(row_ok, -mean_log_prob_pos, 0.0))

    o_ref[...] = jnp.full(o_ref.shape, tile_sum, dtype=jnp.float32)


def supcon_loss_pallas(features, labels=None, mask=None, temperature=0.07,
                       contrast_mode='all', matmul_dtype=jnp.bfloat16, tm=128):
    """features: [bsz, n_views, ...] ; labels: [bsz] int (or None for the SimCLR path)."""
    if features.ndim < 3:
        raise ValueError('`features` needs to be [bsz, n_views, ...], at least 3 dims')
    if features.ndim > 3:
        features = features.reshape(features.shape[0], features.shape[1], -1)
    if contrast_mode != 'all':
        raise NotImplementedError("only contrast_mode='all' is implemented")
    if labels is not None and mask is not None:
        raise ValueError('Cannot define both `labels` and `mask`')
    if mask is not None:
        # TODO(synk): explicit (possibly asymmetric) `mask` argument not wired into the kernel.
        raise NotImplementedError("pass `labels` (or nothing for the SimCLR/eye path)")

    bsz, n_views, dim = features.shape
    n = bsz * n_views

    if labels is None:
        labels = jnp.arange(bsz, dtype=jnp.int32)   # mask = eye(bsz): SimCLR path
    labels = labels.reshape(-1).astype(jnp.int32)
    if labels.shape[0] != bsz:
        raise ValueError('Num of labels does not match num of features')

    # contrast_feature = cat(unbind(features, dim=1), dim=0)  -> view-major [N, D]
    cf = jnp.transpose(features.astype(jnp.float32), (1, 0, 2)).reshape(n, dim)
    # F.normalize(dim=2): x / max(||x||, 1e-12) == x * rsqrt(max(sum x^2, 1e-24))
    cf = cf * lax.rsqrt(jnp.maximum(jnp.sum(cf * cf, axis=1, keepdims=True), 1e-24))

    # Lane/sublane-friendly padding: D -> multiple of 128, N -> multiple of the row tile.
    tm = max(16, _round_up(min(tm, _round_up(n, 16)), 16))
    n_pad = _round_up(n, tm)
    d_pad = _round_up(dim, 128)
    cf = jnp.pad(cf, ((0, n_pad - n), (0, d_pad - dim))).astype(matmul_dtype)

    lab = jnp.pad(jnp.tile(labels, n_views), (0, n_pad - n), constant_values=-1)
    lab_row = lab.reshape(n_pad, 1)
    lab_col = lab.reshape(1, n_pad)

    num_tiles = n_pad // tm
    kernel = functools.partial(supcon_kernel, tm=tm, n_valid=n,
                               inv_temp=1.0 / float(temperature))

    # VMEM budget: resident contrast (+ spare buffer) + [TM, N_pad] f32 temporaries + slack.
    mm_bytes = jnp.dtype(matmul_dtype).itemsize
    est = (2 * mm_bytes * n_pad * d_pad
           + 8 * 4 * tm * n_pad
           + 8 * 4 * tm * d_pad
           + (1 << 20))
    vmem_limit = int(min(max(est, 32 * 1024 * 1024), 64 * 1024 * 1024))

    partial_sums = pl.pallas_call(
        kernel,
        out_shape=jax.ShapeDtypeStruct((num_tiles, 1, 128), jnp.float32),
        grid_spec=pltpu.PrefetchScalarGridSpec(
            num_scalar_prefetch=0,
            grid=(num_tiles,),
            in_specs=[
                pl.BlockSpec((n_pad, d_pad), lambda i: (0, 0)),   # resident contrast block
                pl.BlockSpec((tm, 1), lambda i: (i, 0)),          # anchor-strip labels
                pl.BlockSpec((1, n_pad), lambda i: (0, 0)),       # contrast labels (resident)
            ],
            out_specs=pl.BlockSpec((1, 1, 128), lambda i: (i, 0, 0)),
        ),
        compiler_params=pltpu.CompilerParams(
            dimension_semantics=("parallel",),    # v7x megacore splits the anchor strips
            vmem_limit_bytes=vmem_limit),
    )(cf, lab_row, lab_col)

    # loss.view(anchor_count, batch_size).mean() == mean over all N anchors.
    return jnp.sum(partial_sums[:, 0, 0]) / n


def supcon_loss_ref(features, labels, temperature=0.07):
    """Pure-JAX reference mirroring the PyTorch forward (contrast_mode='all')."""
    bsz, n_views, dim = features.shape
    n = bsz * n_views
    f = features.astype(jnp.float32)
    f = f / jnp.maximum(jnp.linalg.norm(f, axis=2, keepdims=True), 1e-12)
    contrast = jnp.transpose(f, (1, 0, 2)).reshape(n, dim)
    anchor = contrast
    adc = jnp.matmul(anchor, contrast.T, precision=lax.Precision.HIGHEST) / temperature
    logits = adc - jnp.max(adc, axis=1, keepdims=True)
    labels = labels.reshape(-1)
    m = (labels[:, None] == labels[None, :]).astype(jnp.float32)
    m = jnp.tile(m, (n_views, n_views))
    logits_mask = 1.0 - jnp.eye(n, dtype=jnp.float32)
    m = m * logits_mask
    exp_logits = jnp.exp(logits) * logits_mask
    log_prob = logits - jnp.log(jnp.sum(exp_logits, axis=1, keepdims=True))
    mean_log_prob_pos = jnp.sum(m * log_prob, axis=1) / jnp.sum(m, axis=1)
    return jnp.mean(-mean_log_prob_pos)


if __name__ == "__main__":
    key = jax.random.PRNGKey(0)
    k1, k2, k3, k4 = jax.random.split(key, 4)

    # Case 1: small module-typical shapes (bsz=8, n_views=2, dim=32).
    bsz, n_views, dim = 8, 2, 32
    feats = jax.random.normal(k1, (bsz, n_views, dim), dtype=jnp.float32)
    labels = jax.random.randint(k2, (bsz,), 0, 3, dtype=jnp.int32)
    ref = supcon_loss_ref(feats, labels, temperature=0.07)

    loss_f32 = jax.block_until_ready(
        supcon_loss_pallas(feats, labels, temperature=0.07, matmul_dtype=jnp.float32))
    assert jnp.allclose(loss_f32, ref, atol=1e-3, rtol=1e-3), (loss_f32, ref)

    loss_bf16 = jax.block_until_ready(
        supcon_loss_pallas(feats, labels, temperature=0.07, matmul_dtype=jnp.bfloat16))
    assert jnp.allclose(loss_bf16, ref, atol=5e-2, rtol=5e-2), (loss_bf16, ref)

    # Case 2: non-aligned N and D with a multi-tile grid (exercises padding + row tiling).
    bsz2, n_views2, dim2 = 23, 2, 40
    feats2 = jax.random.normal(k3, (bsz2, n_views2, dim2), dtype=jnp.float32)
    labels2 = jax.random.randint(k4, (bsz2,), 0, 5, dtype=jnp.int32)
    ref2 = supcon_loss_ref(feats2, labels2, temperature=0.07)
    loss2 = jax.block_until_ready(
        supcon_loss_pallas(feats2, labels2, temperature=0.07,
                           matmul_dtype=jnp.float32, tm=16))
    assert jnp.allclose(loss2, ref2, atol=1e-3, rtol=1e-3), (loss2, ref2)

    print("KERNEL_OK")
</pallas_src>

<mosaic_0001>
module attributes {stable_mosaic.version = 11 : i64} {
  func.func @supcon_kernel(%arg0: i32, %arg1: memref<16x128xf32, #tpu.memory_space<vmem>>, %arg2: memref<16x1xi32, #tpu.memory_space<vmem>>, %arg3: memref<1x16xi32, #tpu.memory_space<vmem>>, %arg4: memref<1x1x128xf32, #tpu.memory_space<vmem>>) attributes {dimension_semantics = [#tpu.dimension_semantics<parallel>], iteration_bounds = array<i64: 1>, scalar_prefetch = 0 : i64, scratch_operands = 0 : i64, tpu.core_type = #tpu.core_type<tc>, window_params = [{pipeline_mode = #tpu.pipeline_mode<synchronous>, transform_indices = @transform_0, window_bounds = array<i64: 16, 128>}, {transform_indices = @transform_1, window_bounds = array<i64: 16, 1>}, {pipeline_mode = #tpu.pipeline_mode<synchronous>, transform_indices = @transform_2, window_bounds = array<i64: 1, 16>}, {transform_indices = @transform_3, window_bounds = array<i64: 1, 1, 128>}]} {
    %c16_i32 = arith.constant 16 : i32
    %0 = arith.muli %arg0, %c16_i32 : i32
    %1 = tpu.assume_multiple %0, 16 : i32
    %c0 = arith.constant 0 : index
    %c0_0 = arith.constant 0 : index
    %2 = vector.load %arg1[%c0, %c0_0] : memref<16x128xf32, #tpu.memory_space<vmem>>, vector<16x128xf32>
    %3 = arith.index_cast %1 : i32 to index
    %c0_1 = arith.constant 0 : index
    %4 = vector.load %arg1[%3, %c0_1] : memref<16x128xf32, #tpu.memory_space<vmem>>, vector<16x128xf32>
    %cst = arith.constant 14.2857141 : f32
    %5 = vector.broadcast %cst : f32 to vector<16x128xf32>
    %6 = arith.mulf %4, %5 : vector<16x128xf32>
    %cst_2 = arith.constant dense<0.000000e+00> : vector<16x16xf32>
    %7 = tpu.matmul %6, %2, %cst_2 {dimension_numbers = #tpu.dot_dimension_numbers<[1], [1], [0], [0], [0, 0, 1, 0], [], []>} : vector<16x128xf32>, vector<16x128xf32>, vector<16x16xf32> -> vector<16x16xf32>
    %8 = tpu.iota {dimensions = array<i32: 1>} : vector<16x16xi32>
    %9 = tpu.iota {dimensions = array<i32: 0>} : vector<16x16xi32>
    %10 = vector.broadcast %1 : i32 to vector<16x16xi32>
    %11 = arith.addi %9, %10 : vector<16x16xi32>
    %12 = arith.cmpi ne, %8, %11 : vector<16x16xi32>
    %c16_i32_3 = arith.constant 16 : i32
    %13 = vector.broadcast %c16_i32_3 : i32 to vector<16x16xi32>
    %14 = arith.cmpi slt, %8, %13 : vector<16x16xi32>
    %15 = arith.andi %12, %14 : vector<16x16xi1>
    %cst_4 = arith.constant dense<0xFF800000> : vector<16xf32>
    %16 = vector.multi_reduction <maximumf>, %7, %cst_4 [1] : vector<16x16xf32> to vector<16xf32>
    %17 = vector.shape_cast %16 : vector<16xf32> to vector<16x1xf32>
    %18 = vector.broadcast %17 : vector<16x1xf32> to vector<16x16xf32>
    %19 = arith.subf %7, %18 : vector<16x16xf32>
    %20 = math.exp %19 : vector<16x16xf32>
    %cst_5 = arith.constant 0.000000e+00 : f32
    %21 = vector.broadcast %cst_5 : f32 to vector<16x16xf32>
    %22 = arith.select %15, %20, %21 : vector<16x16xi1>, vector<16x16xf32>
    %cst_6 = arith.constant dense<0.000000e+00> : vector<16xf32>
    %23 = vector.multi_reduction <add>, %22, %cst_6 [1] : vector<16x16xf32> to vector<16xf32>
    %24 = vector.shape_cast %23 : vector<16xf32> to vector<16x1xf32>
    %25 = math.log %24 : vector<16x1xf32>
    %c0_7 = arith.constant 0 : index
    %c0_8 = arith.constant 0 : index
    %26 = vector.load %arg2[%c0_7, %c0_8] : memref<16x1xi32, #tpu.memory_space<vmem>>, vector<16x1xi32>
    %c0_9 = arith.constant 0 : index
    %c0_10 = arith.constant 0 : index
    %27 = vector.load %arg3[%c0_9, %c0_10] : memref<1x16xi32, #tpu.memory_space<vmem>>, vector<1x16xi32>
    %28 = vector.broadcast %26 : vector<16x1xi32> to vector<16x16xi32>
    %29 = vector.broadcast %27 : vector<1x16xi32> to vector<16x16xi32>
    %30 = arith.cmpi eq, %28, %29 : vector<16x16xi32>
    %31 = arith.andi %30, %15 : vector<16x16xi1>
    %cst_11 = arith.constant 1.000000e+00 : f32
    %cst_12 = arith.constant 0.000000e+00 : f32
    %32 = vector.broadcast %cst_11 : f32 to vector<16x16xf32>
    %33 = vector.broadcast %cst_12 : f32 to vector<16x16xf32>
    %34 = arith.select %31, %32, %33 : vector<16x16xi1>, vector<16x16xf32>
    %cst_13 = arith.constant dense<0.000000e+00> : vector<16xf32>
    %35 = vector.multi_reduction <add>, %34, %cst_13 [1] : vector<16x16xf32> to vector<16xf32>
    %36 = vector.shape_cast %35 : vector<16xf32> to vector<16x1xf32>
    %37 = arith.mulf %34, %19 : vector<16x16xf32>
    %cst_14 = arith.constant dense<0.000000e+00> : vector<16xf32>
    %38 = vector.multi_reduction <add>, %37, %cst_14 [1] : vector<16x16xf32> to vector<16xf32>
    %39 = vector.shape_cast %38 : vector<16xf32> to vector<16x1xf32>
    %40 = arith.mulf %36, %25 : vector<16x1xf32>
    %41 = arith.subf %39, %40 : vector<16x1xf32>
    %cst_15 = arith.constant 1.000000e+00 : f32
    %42 = vector.broadcast %cst_15 : f32 to vector<16x1xf32>
    %43 = arith.maximumf %36, %42 : vector<16x1xf32>
    %44 = arith.divf %41, %43 : vector<16x1xf32>
    %45 = tpu.iota {dimensions = array<i32: 0>} : vector<16x1xi32>
    %46 = vector.broadcast %1 : i32 to vector<16x1xi32>
    %47 = arith.addi %45, %46 : vector<16x1xi32>
    %c16_i32_16 = arith.constant 16 : i32
    %48 = vector.broadcast %c16_i32_16 : i32 to vector<16x1xi32>
    %49 = arith.cmpi slt, %47, %48 : vector<16x1xi32>
    %cst_17 = arith.constant 0.000000e+00 : f32
    %50 = vector.broadcast %cst_17 : f32 to vector<16x1xf32>
    %51 = arith.cmpf ogt, %36, %50 : vector<16x1xf32>
    %52 = arith.andi %49, %51 : vector<16x1xi1>
    %cst_18 = arith.constant 0.000000e+00 : f32
    %53 = vector.broadcast %cst_18 : f32 to vector<16x1xf32>
    %54 = arith.subf %53, %44 : vector<16x1xf32>
    %cst_19 = arith.constant 0.000000e+00 : f32
    %55 = vector.broadcast %cst_19 : f32 to vector<16x1xf32>
    %56 = arith.select %52, %54, %55 : vector<16x1xi1>, vector<16x1xf32>
    %57 = vector.shape_cast %56 : vector<16x1xf32> to vector<1x16x1xf32>
    %cst_20 = arith.constant dense<0.000000e+00> : vector<1xf32>
    %58 = vector.multi_reduction <add>, %57, %cst_20 [1, 2] : vector<1x16x1xf32> to vector<1xf32>
    %59 = vector.shape_cast %58 : vector<1xf32> to vector<1x1x1xf32>
    %60 = vector.extract %59[0, 0, 0] : f32 from vector<1x1x1xf32>
    %61 = vector.broadcast %60 : f32 to vector<1x1x128xf32>
    %c0_21 = arith.constant 0 : index
    %c0_22 = arith.constant 0 : index
    %c0_23 = arith.constant 0 : index
    %62 = vector.load %arg4[%c0_21, %c0_22, %c0_23] : memref<1x1x128xf32, #tpu.memory_space<vmem>>, vector<1x1x128xf32>
    tpu.vector_store %arg4[%c0_21, %c0_22, %c0_23], %61 {strides = array<i32>} : memref<1x1x128xf32, #tpu.memory_space<vmem>>, vector<1x1x128xf32>,
    return
  }
  func.func @transform_0(%arg0: i32) -> (i32, i32) {
    %c0_i32 = arith.constant 0 : i32
    %c0_i32_0 = arith.constant 0 : i32
    %c0_i32_1 = arith.constant 0 : i32
    return %c0_i32, %c0_i32_0 : i32, i32
  }
  func.func @transform_1(%arg0: i32) -> (i32, i32) {
    %c0_i32 = arith.constant 0 : i32
    %c0_i32_0 = arith.constant 0 : i32
    return %arg0, %c0_i32 : i32, i32
  }
  func.func @transform_2(%arg0: i32) -> (i32, i32) {
    %c0_i32 = arith.constant 0 : i32
    %c0_i32_0 = arith.constant 0 : i32
    %c0_i32_1 = arith.constant 0 : i32
    return %c0_i32, %c0_i32_0 : i32, i32
  }
  func.func @transform_3(%arg0: i32) -> (i32, i32, i32) {
    %c0_i32 = arith.constant 0 : i32
    %c0_i32_0 = arith.constant 0 : i32
    %c0_i32_1 = arith.constant 0 : i32
    return %arg0, %c0_i32, %c0_i32_0 : i32, i32, i32
  }
}

</mosaic_0001>

<bundles_post_ra>
// kernel: tpu_custom_call.1
= control target key start
LH: loop header
LB: loop body
LE: loop exit
PB: predicated region body
PF: predicated region fallthrough
CT: control target
= control target key end

     0   :  { %s351_s0 = inlined_call_operand.vmem [shape: f32[16,128], index: 0, kind: input, shape index: {}]   ;;  %s352_s1 = inlined_call_operand.vmem [shape: s32[16,1], index: 1, kind: input, shape index: {}]   ;;  %s353_s2 = inlined_call_operand.vmem [shape: s32[1,16], index: 2, kind: input, shape index: {}]   ;;  %s354_s3 = inlined_call_operand.hbm [shape: f32[1,1,128], index: 3, kind: output, shape index: {}]  }
   0x1   :  { %v16_v0 = vld [vmem:[%s351_s0] sm:$0xff]  ;;  %v17_v1 = vld [vmem:[%s351_s0 + $0x8] sm:$0xff] }
   0x2   :  { %8 = vsyncpa [#allocation3], 0  ;;  %v230_v2 = vpack.c.bf16 %v17_v1, %v16_v0  ;;  %v21_v3 = vmul.f32 14.285714, %v16_v0  ;;  %v22_v4 = vmul.f32 14.285714, %v17_v1  ;;  %v98_v11 = vlaneseq }
   0x3   :  { %v136_v5 = vld [vmem:[%s352_s1] sm:$0xff]  ;;  %v277_v6 = vmov 0   ;;  %v137_v7 = vld [vmem:[%s352_s1 + $0x8] sm:$0xff]  ;;  %vm111_vm0 = vcmask 130048   ;;  %v278_v21 = vmov 0.0   ;;  %vm189_vm11 = vcmask 7168  }
   0x4   :  { %231 = vmatprep.subr.bf16.mxu0 %v230_v2  ;;  %227 = vmatprep.mubr.f32.mxu0 %v21_v3  ;;  %v99_v13 = vand.u32 127, %v98_v11  ;;  %v101_v14 = vshrl.u32 %v98_v11, 7  ;;  %v218_v15 = vld [vmem:[%s353_s2] ss:$0 sm:$0xff]  ;;  %s279_s1 = smov [#allocation2]  }
   0x5   :  { %233 = vmatpush3.bf16.xpose.msra.mxu0 %v230_v2  ;;  %239 = vset.pattern.permute.xlu1 %v277_v6  ;;  %s210_s2 = sshll.u32 %s279_s1, 4  ;;  %s211_s2 = int_to_ptr.vmem [resolvable:$true] %s210_s2 }
   0x6   :  { %240 = vset.pattern.permute.xlu0 %v277_v6  ;;  %140 = vperm.xlu1 %239, %v136_v5   ;;  %vm106_vm1 = vcmp.ne.s32.totalorder %v99_v13, %v101_v14  ;;  %vm108_vm2 = vcmp.lt.s32.totalorder %v99_v13, 16  ;;  %v102_v18 = vadd.s32 8, %v101_v14  ;;  %s253_s22 = scalar_lea.vmem %s211_s2, 16  ;;  %s257_s23 = scalar_lea.vmem %s211_s2, 32 }
   0x7   :  { %vm317_vm3 = vmand %vm106_vm1, %vm108_vm2  ;;  %p254_p0 = scmp.ne.s32.totalorder %s211_s2, %s253_s22  ;;  %p258_p1 = scmp.lt.s32.totalorder %s211_s2, %s211_s2 }
   0x8   :  { %vm107_vm6 = vcmp.ne.s32.totalorder %v99_v13, %v102_v18  ;;  %p259_p2 = scmp.lt.s32.totalorder %s257_s23, %s253_s22 }
   0x9   :  { %vm323_vm7 = vmand %vm107_vm6, %vm108_vm2 }
   0xa   :  { %143 = vperm.xlu1 %239, %v137_v7   ;;  %p260_p3 = por %p259_p2, %p258_p1 }
   0xc   :  { %228 = vmatmul.mubr.f32.vlgmr.msra.gmra.mrb[0].mxu0 %v22_v4  ;;  %p261_p4 = pnand %p260_p3, %p254_p0 }
  0x85   :  { %v141_v16 = vpop.permute.xlu1 %140 }
  0x86   :  { %vm149_vm4 = vcmp.eq.s32.totalorder %v141_v16, %v218_v15 }
  0x87   :  { %vm151_vm5 = vmand %vm149_vm4, %vm317_vm3 }
  0x88   :  { %v153_v23 = vsel %vm151_vm5, 1.0, %v278_v21 }
  0x89   :  { %v144_v19 = vpop.permute.xlu1 %143  ;;  %v155_v24 = vsel %vm111_vm0, %v153_v23, 0.0 }
  0x8a   :  { %vm150_vm8 = vcmp.eq.s32.totalorder %v144_v19, %v218_v15 }
  0x8b   :  { %vm152_vm9 = vmand %vm150_vm8, %vm323_vm7 }
  0x8c   :  { %v154_v22 = vsel %vm152_vm9, 1.0, %v278_v21 }
  0x8d   :  { %v158_v37 = vsel %vm111_vm0, %v154_v22, 0.0 }
  0xdf   :  { %v229_v8 = vpop.f32.mrb[0].mxu0 }
  0xe0   :  { %v89_v9 = vpop.f32.mrb[1].mxu0  ;;  %v115_v12 = vsel %vm111_vm0, %v229_v8, -inf }
  0xe1   :  { %v112_v10 = vsel %vm111_vm0, %v89_v9, -inf }
  0xe2   :  { %113 = vmax.xlane.f32.xlu0 %v112_v10 }
  0xe6   :  { %116 = vmax.xlane.f32.xlu0 %v115_v12 }
  0xea   :  { %156 = vadd.xlane.f32.xlu0 %v155_v24 }
 0x16f   :  { %v114_v25 = vpop.xlane.xlu0 %113 }
 0x170   :  { %v118_v26 = vsub.f32 %v89_v9, %v114_v25 }
 0x172   :  { %v120_v27 = vmul.f32 1.442695, %v118_v26  ;;  %v161_v39 = vmul.f32 %v153_v23, %v118_v26 }
 0x173   :  { %v117_v28 = vpop.xlane.xlu0 %116 }
 0x174   :  { %241 = vpow2.f32 %v120_v27  ;;  %v119_v29 = vsub.f32 %v229_v8, %v117_v28  ;;  %v163_v40 = vsel %vm111_vm0, %v161_v39, 0.0 }
 0x176   :  { %v122_v30 = vmul.f32 1.442695, %v119_v29  ;;  %v162_v31 = vmul.f32 %v154_v22, %v119_v29 }
 0x177   :  { %v157_v42 = vpop.xlane.xlu0 %156 }
 0x178   :  { %243 = vpow2.f32 %v122_v30  ;;  %v166_v41 = vsel %vm111_vm0, %v162_v31, 0.0  ;;  %v173_v44 = vmax.f32 %v157_v42, 1.0  ;;  %vm181_vm10 = vcmp.gt.f32.partialorder %v157_v42, 0.0 }
 0x17e   :  { %v242_v32 = vpop.eup %241 }
 0x17f   :  { %v124_v33 = vsel %vm317_vm3, %v242_v32, 0.0 }
 0x180   :  { %v126_v34 = vsel %vm111_vm0, %v124_v33, 0.0 }
 0x181   :  { %127 = vadd.xlane.f32.xlu0 %v126_v34 }
 0x182   :  { %v244_v35 = vpop.eup %243 }
 0x183   :  { %v125_v36 = vsel %vm323_vm7, %v244_v35, 0.0 }
 0x184   :  { %v129_v38 = vsel %vm111_vm0, %v125_v36, 0.0 }
 0x185   :  { %159 = vadd.xlane.f32.xlu0 %v158_v37  ;;  %130 = vadd.xlane.f32.xlu1 %v129_v38 }
 0x189   :  { %164 = vadd.xlane.f32.xlu0 %v163_v40 }
 0x18d   :  { %167 = vadd.xlane.f32.xlu0 %v166_v41 }
 0x20e   :  { %v128_v43 = vpop.xlane.xlu0 %127 }
 0x20f   :  { %245 = vlog2.f32 %v128_v43 }
 0x212   :  { %v131_v45 = vpop.xlane.xlu1 %130  ;;  %v160_v46 = vpop.xlane.xlu0 %159 }
 0x213   :  { %247 = vlog2.f32 %v131_v45  ;;  %v174_v47 = vmax.f32 %v160_v46, 1.0  ;;  %vm182_vm12 = vcmp.gt.f32.partialorder %v160_v46, 0.0 }
 0x214   :  { %249 = vrcp.f32 %v173_v44 }
 0x215   :  { %251 = vrcp.f32 %v174_v47 }
 0x216   :  { %v165_v50 = vpop.xlane.xlu0 %164 }
 0x219   :  { %v246_v48 = vpop.eup %245 }
 0x21a   :  { %v133_v49 = vmul.f32 0.6931472, %v246_v48  ;;  %v168_v58 = vpop.xlane.xlu0 %167 }
 0x21c   :  { %v169_v51 = vmul.f32 %v157_v42, %v133_v49 }
 0x21d   :  { %v248_v52 = vpop.eup %247 }
 0x21e   :  { %v135_v53 = vmul.f32 0.6931472, %v248_v52  ;;  %v171_v54 = vsub.f32 %v165_v50, %v169_v51  ;;  %v250_v55 = vpop.eup %249 }
 0x21f   :  { %v252_v61 = vpop.eup %251 }
 0x220   :  { %v176_v56 = vmul.f32 %v250_v55, %v171_v54  ;;  %v170_v57 = vmul.f32 %v160_v46, %v135_v53 }
 0x222   :  { %v185_v59 = vsub.f32 0.0, %v176_v56  ;;  %v172_v60 = vsub.f32 %v168_v58, %v170_v57 }
 0x224   :  { %v178_v62 = vmul.f32 %v252_v61, %v172_v60  ;;  %v187_v0 = vsel %vm181_vm10, %v185_v59, 0.0 }
 0x225   :  { %v190_v2 = vsel %vm189_vm11, %v187_v0, 0.0 }
 0x226   :  { %v186_v63 = vsub.f32 0.0, %v178_v62 }
 0x228   :  { %v188_v1 = vsel %vm182_vm12, %v186_v63, 0.0 }
 0x229   :  { %v191_v3 = vsel %vm189_vm11, %v188_v1, 0.0 }
 0x22a   :  { %v192_v4 = vadd.f32 %v191_v3, %v190_v2 }
 0x22c   :  { %193 = vadd.xlane.f32.xlu0 %v192_v4 }
 0x2b9   :  { %v194_v5 = vpop.xlane.xlu0 %193 }
 0x2ba   :  { %v195_v6 = vrot.slane %v194_v5, 4 }
 0x2bc   :  { %v196_v7 = vadd.f32 %v195_v6, %v194_v5 }
 0x2be   :  { %v197_v8 = vrot.slane %v196_v7, 2 }
 0x2c0   :  { %v198_v9 = vadd.f32 %v197_v8, %v196_v7 }
 0x2c2   :  { %v199_v10 = vrot.slane %v198_v9, 1 }
 0x2c4   :  { %v200_v11 = vadd.f32 %v199_v10, %v198_v9 }
 0x2c6   :  { %234 = vpush %v200_v11 }
 0x2f7   :  { %s235_s21 = spop %234 }
 0x2f8   :  { %v202_v12 = vstv %s235_s21 }
 0x2f9   :  { %203 = vst [vmem:[#allocation2] sm:$0x1] %v202_v12 }
 0x2fa   :  { %264 = shalt.err (!%p261_p4)
}
 0x2fb   :  { %s265_s26 = scalar_lea.hbm %s354_s3, 16 }
 0x2fc   :  { %p266_p5 = scmp.ne.s32.totalorder %s354_s3, %s265_s26  ;;  %p269_p6 = scmp.lt.u32.totalorder %s265_s26, %s354_s3 }
 0x2fe   :  { %p271_p7 = pnand %p269_p6, %p266_p5 }
 0x300   :  { %274 = shalt.err (!%p271_p7)
}
 0x301   :  { %213 = dma.vmem_to_hbm [thread:$0]  %s211_s2, 16, %s354_s3, [#allocation3]  }
 0x302   :  { %275 = dma.done.wait [#allocation3], 16  }
 0x303   :  { %276 = vsyncadd [#allocation3], 4294967280 }
 0x304   :  { %217 = vsyncpa [#allocation3], 1 }

</bundles_post_ra>
